<compile_context>
chip_gen: v7x
topology: tpu7x:2x2x1
jax: 0.10.0
libtpu: 0.0.40
codegen_flags: <defaults>
</compile_context>

<pallas_src>
import functools

import jax
import jax.numpy as jnp
from jax import lax
from jax.experimental import pallas as pl
from jax.experimental.pallas import tpu as pltpu


def _vmem_limit_bytes() -> int:
    """Generation-aware VMEM budget with headroom (never the full physical)."""
    default = 64 * 1024 * 1024
    try:
        info = pltpu.get_tpu_info()
        cap = int(getattr(info, "vmem_capacity_bytes", 0) or 0)
    except Exception:  # pragma: no cover - info query unavailable
        cap = 0
    if cap <= 0:
        return default
    # ~75% of physical VMEM, capped at 100 MiB (v7x: ~48 MiB, v5e/v6e: ~96 MiB).
    return int(min(cap * 3 // 4, 100 * 1024 * 1024))


def _mha_kernel(x_ref, wq_ref, bq_ref, wk_ref, wv_ref, bv_ref, wo_ref, bo_ref,
                o_ref, k_scr, v_scr, ctx_scr, *, n_head: int, head_dim: int,
                seq_len: int, q_tile: int, kv_chunk: int, compute_dtype,
                approx_recip: bool):
    f32 = jnp.float32
    cd = compute_dtype
    t_pad = k_scr.shape[0]
    qi = pl.program_id(1)

    # ---- K / V projections: computed ONCE per batch item, chunked over rows
    # so the f32 intermediates never exceed (kv_chunk, S).
    @pl.when(qi == 0)
    def _compute_kv():
        n_chunks = t_pad // kv_chunk

        def chunk_body(c, carry):
            off = pl.multiple_of(c * kv_chunk, kv_chunk)
            xc = x_ref[0, pl.ds(off, kv_chunk), :]                     # (C, S) cd
            kc = jnp.dot(xc, wk_ref[...], preferred_element_type=f32)  # no bias
            vc = jnp.dot(xc, wv_ref[...], preferred_element_type=f32) + bv_ref[0]
            k_scr[pl.ds(off, kv_chunk), :] = kc.astype(cd)
            v_scr[pl.ds(off, kv_chunk), :] = vc.astype(cd)
            return carry

        lax.fori_loop(0, n_chunks, chunk_body, 0)

    # ---- Q projection for this query tile (scale already folded into wq/bq).
    q_off = pl.multiple_of(qi * q_tile, q_tile)
    xq = x_ref[0, pl.ds(q_off, q_tile), :]                             # (TQ, S) cd
    q = jnp.dot(xq, wq_ref[...], preferred_element_type=f32) + bq_ref[0]
    qc = q.astype(cd)

    # ---- Additive key-padding mask, computed once and reused by every head.
    # Padded key columns (zero-padded x) must not contribute to the softmax.
    if t_pad > seq_len:
        key_pos = lax.broadcasted_iota(jnp.int32, (1, t_pad), 1)
        mask_add = jnp.where(key_pos < seq_len, 0.0, -1e30).astype(f32)
    else:
        mask_add = None

    # ---- Per-head attention (static loop; n_head is small).
    for h in range(n_head):
        lo = h * head_dim
        hi = lo + head_dim
        qh = qc[:, lo:hi]                                              # (TQ, D)
        kh = k_scr[:, lo:hi]                                           # (TKV, D)
        vh = v_scr[:, lo:hi]                                           # (TKV, D)

        # scores = qh @ kh.T without materializing the transpose.
        s = lax.dot_general(qh, kh, (((1,), (1,)), ((), ())),
                            preferred_element_type=f32)                # (TQ, TKV) f32
        if mask_add is not None:
            s = s + mask_add

        # Softmax in f32 (matches qk.float(); F.softmax(dim=-1)).
        s = s - jnp.max(s, axis=-1, keepdims=True)
        p = jnp.exp(s)
        denom = jnp.sum(p, axis=-1, keepdims=True)
        w = p * pl.reciprocal(denom, approx=approx_recip)

        ctx = jnp.dot(w.astype(cd), vh, preferred_element_type=f32)    # (TQ, D)
        ctx_scr[:, lo:hi] = ctx.astype(cd)

    # ---- Output projection: one full-S (well-shaped) MXU contraction.
    out = jnp.dot(ctx_scr[...], wo_ref[...], preferred_element_type=f32) + bo_ref[0]
    o_ref[0] = out.astype(o_ref.dtype)


def multi_head_attention(x, params, n_head: int, *, q_tile: int = 256,
                         compute_dtype=jnp.bfloat16):
    """x: (B, T, n_state) float32. params: dict of transposed weights/biases."""
    B, T, S = x.shape
    head_dim = S // n_head
    cd = jnp.dtype(compute_dtype)
    high_precision = cd == jnp.dtype(jnp.float32)

    # Fold the dual head_dim**-0.25 scaling into the q/k projections (host side).
    scale = float(head_dim) ** -0.25
    wq = (params["wq"] * scale).astype(cd)
    bq = (params["bq"] * scale).astype(jnp.float32)
    wk = (params["wk"] * scale).astype(cd)
    wv = params["wv"].astype(cd)
    bv = params["bv"].astype(jnp.float32)
    wo = params["wo"].astype(cd)
    bo = params["bo"].astype(jnp.float32)

    # Pad T to a sublane multiple and to a multiple of the query tile.
    t_pad = ((T + 7) // 8) * 8
    tq = min(q_tile, t_pad)
    t_pad = ((t_pad + tq - 1) // tq) * tq
    if t_pad != T:
        x = jnp.pad(x, ((0, 0), (0, t_pad - T), (0, 0)))
    x_c = x.astype(cd)

    n_qt = t_pad // tq
    grid = (B, n_qt)

    kernel = functools.partial(
        _mha_kernel, n_head=n_head, head_dim=head_dim, seq_len=T,
        q_tile=tq, kv_chunk=tq, compute_dtype=cd,
        approx_recip=not high_precision)

    # Grid-invariant operands: single-buffered (no double-buffer VMEM waste).
    single = pl.Buffered(1)
    w_spec = pl.BlockSpec((S, S), lambda b, qi: (0, 0), pipeline_mode=single)
    b_spec = pl.BlockSpec((1, S), lambda b, qi: (0, 0), pipeline_mode=single)

    # Advisory cost estimate (K/V projections counted once per batch item).
    itm = int(cd.itemsize)
    flops = (B * 4 * t_pad * S * S                 # K,V projections, once per b
             + B * n_qt * 4 * tq * S * S           # Q + out projections per tile
             + B * n_qt * 4 * tq * t_pad * S)      # QK^T + PV over all heads
    cost = pl.CostEstimate(
        flops=int(flops),
        transcendentals=int(B * n_qt * n_head * tq * t_pad),
        bytes_accessed=int(B * t_pad * S * itm                 # x, once per b
                           + 4 * S * S * itm + 3 * S * 4       # weights/biases
                           + B * t_pad * S * 4))               # output writeback

    out = pl.pallas_call(
        kernel,
        out_shape=jax.ShapeDtypeStruct((B, t_pad, S), jnp.float32),
        grid_spec=pltpu.PrefetchScalarGridSpec(
            num_scalar_prefetch=0,
            grid=grid,
            in_specs=[
                pl.BlockSpec((1, t_pad, S), lambda b, qi: (b, 0, 0)),  # x (full seq)
                w_spec, b_spec,                                        # query W, b
                w_spec,                                                # key   W (no bias)
                w_spec, b_spec,                                        # value W, b
                w_spec, b_spec,                                        # out   W, b
            ],
            out_specs=pl.BlockSpec((1, tq, S), lambda b, qi: (b, qi, 0)),
            scratch_shapes=[
                pltpu.VMEM((t_pad, S), cd),    # K, persistent across query tiles
                pltpu.VMEM((t_pad, S), cd),    # V, persistent across query tiles
                pltpu.VMEM((tq, S), cd),       # per-head context accumulator
            ]),
        compiler_params=pltpu.CompilerParams(
            # b parallel (megacore / v7x dual-TC); qi arbitrary (carries K/V scratch).
            dimension_semantics=("parallel", "arbitrary"),
            vmem_limit_bytes=_vmem_limit_bytes()),
        cost_estimate=cost,
    )(x_c, wq, bq, wk, wv, bv, wo, bo)

    return out[:, :T, :]


def _reference(x, params, n_head):
    """Pure-JAX reference mirroring the PyTorch forward (xa=None, mask=None)."""
    B, T, S = x.shape
    D = S // n_head
    q = x @ params["wq"] + params["bq"][0]
    k = x @ params["wk"]
    v = x @ params["wv"] + params["bv"][0]
    scale = D ** (-0.25)
    q = q.reshape(B, T, n_head, D).transpose(0, 2, 1, 3) * scale
    k = k.reshape(B, T, n_head, D).transpose(0, 2, 3, 1) * scale
    v = v.reshape(B, T, n_head, D).transpose(0, 2, 1, 3)
    qk = (q @ k).astype(jnp.float32)
    w = jax.nn.softmax(qk, axis=-1).astype(x.dtype)
    wv = (w @ v).transpose(0, 2, 1, 3).reshape(B, T, S)
    return wv @ params["wo"] + params["bo"][0]


if __name__ == "__main__":
    B, T, n_state, n_head = 2, 8, 32, 4

    key = jax.random.PRNGKey(0)
    keys = jax.random.split(key, 8)

    # Deterministic parameter init (shapes from the module's __init__).
    # Weights stored transposed to (in, out); biases as (1, n_state).
    def winit(k):
        return (jax.random.normal(k, (n_state, n_state), jnp.float32)
                / jnp.sqrt(jnp.float32(n_state)))

    params = {
        "wq": winit(keys[0]), "bq": jax.random.normal(keys[1], (1, n_state)) * 0.02,
        "wk": winit(keys[2]),
        "wv": winit(keys[3]), "bv": jax.random.normal(keys[4], (1, n_state)) * 0.02,
        "wo": winit(keys[5]), "bo": jax.random.normal(keys[6], (1, n_state)) * 0.02,
    }
    # NOTE: self.layer_norm and self.dropout are defined in __init__ but never
    # used in forward(), so they are intentionally not implemented.

    x = jax.random.normal(keys[7], (B, T, n_state), jnp.float32)
    ref = _reference(x, params, n_head)

    # Tight correctness check: f32 compute path (exact reciprocal).
    out_f32 = jax.block_until_ready(
        multi_head_attention(x, params, n_head, compute_dtype=jnp.float32))
    assert out_f32.shape == (B, T, n_state)
    assert jnp.allclose(out_f32, ref, atol=1e-4, rtol=1e-4), "f32 path mismatch"

    # Production config: bf16 MXU operands, approx reciprocal (softmax rows sum
    # to ~1 within EUP accuracy; tolerance reflects bf16 rounding at this size).
    out_bf16 = jax.block_until_ready(
        multi_head_attention(x, params, n_head, compute_dtype=jnp.bfloat16))
    assert out_bf16.shape == (B, T, n_state)
    assert jnp.allclose(out_bf16, ref, atol=0.1, rtol=0.1), "bf16 path mismatch"

    print("KERNEL_OK")
</pallas_src>

<mosaic_0001>
module attributes {stable_mosaic.version = 11 : i64} {
  func.func @_mha_kernel(%arg0: i32, %arg1: i32, %arg2: memref<1x8x32xf32, #tpu.memory_space<vmem>>, %arg3: memref<32x32xf32, #tpu.memory_space<vmem>>, %arg4: memref<1x32xf32, #tpu.memory_space<vmem>>, %arg5: memref<32x32xf32, #tpu.memory_space<vmem>>, %arg6: memref<32x32xf32, #tpu.memory_space<vmem>>, %arg7: memref<1x32xf32, #tpu.memory_space<vmem>>, %arg8: memref<32x32xf32, #tpu.memory_space<vmem>>, %arg9: memref<1x32xf32, #tpu.memory_space<vmem>>, %arg10: memref<1x8x32xf32, #tpu.memory_space<vmem>>, %arg11: memref<8x32xf32, #tpu.memory_space<vmem>>, %arg12: memref<8x32xf32, #tpu.memory_space<vmem>>, %arg13: memref<8x32xf32, #tpu.memory_space<vmem>>) attributes {dimension_semantics = [#tpu.dimension_semantics<parallel>, #tpu.dimension_semantics<arbitrary>], iteration_bounds = array<i64: 2, 1>, scalar_prefetch = 0 : i64, scratch_operands = 3 : i64, tpu.core_type = #tpu.core_type<tc>, window_params = [{transform_indices = @transform_0, window_bounds = array<i64: 1, 8, 32>}, {pipeline_mode = #tpu.pipeline_mode<synchronous>, transform_indices = @transform_1, window_bounds = array<i64: 32, 32>}, {pipeline_mode = #tpu.pipeline_mode<synchronous>, transform_indices = @transform_2, window_bounds = array<i64: 1, 32>}, {pipeline_mode = #tpu.pipeline_mode<synchronous>, transform_indices = @transform_3, window_bounds = array<i64: 32, 32>}, {pipeline_mode = #tpu.pipeline_mode<synchronous>, transform_indices = @transform_4, window_bounds = array<i64: 32, 32>}, {pipeline_mode = #tpu.pipeline_mode<synchronous>, transform_indices = @transform_5, window_bounds = array<i64: 1, 32>}, {pipeline_mode = #tpu.pipeline_mode<synchronous>, transform_indices = @transform_6, window_bounds = array<i64: 32, 32>}, {pipeline_mode = #tpu.pipeline_mode<synchronous>, transform_indices = @transform_7, window_bounds = array<i64: 1, 32>}, {transform_indices = @transform_8, window_bounds = array<i64: 1, 8, 32>}]} {
    %c0_i32 = arith.constant 0 : i32
    %0 = arith.cmpi eq, %arg1, %c0_i32 : i32
    %1 = arith.extui %0 : i1 to i32
    %c0_i32_0 = arith.constant 0 : i32
    %2 = arith.cmpi ne, %1, %c0_i32_0 : i32
    scf.if %2 {
      %c0_i32_53 = arith.constant 0 : i32
      %c8_i32_54 = arith.constant 8 : i32
      %90 = arith.muli %c0_i32_53, %c8_i32_54 : i32
      %91 = tpu.assume_multiple %90, 8 : i32
      %c0_55 = arith.constant 0 : index
      %92 = arith.index_cast %91 : i32 to index
      %c0_56 = arith.constant 0 : index
      %93 = vector.load %arg2[%c0_55, %92, %c0_56] : memref<1x8x32xf32, #tpu.memory_space<vmem>>, vector<1x8x32xf32>
      %94 = vector.shape_cast %93 : vector<1x8x32xf32> to vector<8x32xf32>
      %c0_57 = arith.constant 0 : index
      %c0_58 = arith.constant 0 : index
      %95 = vector.load %arg5[%c0_57, %c0_58] : memref<32x32xf32, #tpu.memory_space<vmem>>, vector<32x32xf32>
      %cst_59 = arith.constant dense<0.000000e+00> : vector<8x32xf32>
      %96 = tpu.matmul %94, %95, %cst_59 {dimension_numbers = #tpu.dot_dimension_numbers<[1], [0], [0], [1], [0, 0, 1, 1], [], []>} : vector<8x32xf32>, vector<32x32xf32>, vector<8x32xf32> -> vector<8x32xf32>
      %c0_60 = arith.constant 0 : index
      %c0_61 = arith.constant 0 : index
      %97 = vector.load %arg6[%c0_60, %c0_61] : memref<32x32xf32, #tpu.memory_space<vmem>>, vector<32x32xf32>
      %cst_62 = arith.constant dense<0.000000e+00> : vector<8x32xf32>
      %98 = tpu.matmul %94, %97, %cst_62 {dimension_numbers = #tpu.dot_dimension_numbers<[1], [0], [0], [1], [0, 0, 1, 1], [], []>} : vector<8x32xf32>, vector<32x32xf32>, vector<8x32xf32> -> vector<8x32xf32>
      %c0_63 = arith.constant 0 : index
      %c0_64 = arith.constant 0 : index
      %99 = vector.load %arg7[%c0_63, %c0_64] : memref<1x32xf32, #tpu.memory_space<vmem>>, vector<1x32xf32>
      %100 = vector.shape_cast %99 : vector<1x32xf32> to vector<32xf32>
      %101 = vector.shape_cast %100 : vector<32xf32> to vector<1x32xf32>
      %102 = vector.broadcast %101 : vector<1x32xf32> to vector<8x32xf32>
      %103 = arith.addf %98, %102 : vector<8x32xf32>
      %104 = arith.index_cast %91 : i32 to index
      %c0_65 = arith.constant 0 : index
      %105 = vector.load %arg11[%104, %c0_65] : memref<8x32xf32, #tpu.memory_space<vmem>>, vector<8x32xf32>
      tpu.vector_store %arg11[%104, %c0_65], %96 {strides = array<i32>} : memref<8x32xf32, #tpu.memory_space<vmem>>, vector<8x32xf32>,
      %106 = arith.index_cast %91 : i32 to index
      %c0_66 = arith.constant 0 : index
      %107 = vector.load %arg12[%106, %c0_66] : memref<8x32xf32, #tpu.memory_space<vmem>>, vector<8x32xf32>
      tpu.vector_store %arg12[%106, %c0_66], %103 {strides = array<i32>} : memref<8x32xf32, #tpu.memory_space<vmem>>, vector<8x32xf32>,
      %c1_i32 = arith.constant 1 : i32
    } else {
    }
    %c8_i32 = arith.constant 8 : i32
    %3 = arith.muli %arg1, %c8_i32 : i32
    %4 = tpu.assume_multiple %3, 8 : i32
    %c0 = arith.constant 0 : index
    %5 = arith.index_cast %4 : i32 to index
    %c0_1 = arith.constant 0 : index
    %6 = vector.load %arg2[%c0, %5, %c0_1] : memref<1x8x32xf32, #tpu.memory_space<vmem>>, vector<1x8x32xf32>
    %7 = vector.shape_cast %6 : vector<1x8x32xf32> to vector<8x32xf32>
    %c0_2 = arith.constant 0 : index
    %c0_3 = arith.constant 0 : index
    %8 = vector.load %arg3[%c0_2, %c0_3] : memref<32x32xf32, #tpu.memory_space<vmem>>, vector<32x32xf32>
    %cst = arith.constant dense<0.000000e+00> : vector<8x32xf32>
    %9 = tpu.matmul %7, %8, %cst {dimension_numbers = #tpu.dot_dimension_numbers<[1], [0], [0], [1], [0, 0, 1, 1], [], []>} : vector<8x32xf32>, vector<32x32xf32>, vector<8x32xf32> -> vector<8x32xf32>
    %c0_4 = arith.constant 0 : index
    %c0_5 = arith.constant 0 : index
    %10 = vector.load %arg4[%c0_4, %c0_5] : memref<1x32xf32, #tpu.memory_space<vmem>>, vector<1x32xf32>
    %11 = vector.shape_cast %10 : vector<1x32xf32> to vector<32xf32>
    %12 = vector.shape_cast %11 : vector<32xf32> to vector<1x32xf32>
    %13 = vector.broadcast %12 : vector<1x32xf32> to vector<8x32xf32>
    %14 = arith.addf %9, %13 : vector<8x32xf32>
    %15 = vector.extract_strided_slice %14 {offsets = [0, 0], sizes = [8, 8], strides = [1, 1]} : vector<8x32xf32> to vector<8x8xf32>
    %c0_6 = arith.constant 0 : index
    %c0_7 = arith.constant 0 : index
    %16 = vector.load %arg11[%c0_6, %c0_7] : memref<8x32xf32, #tpu.memory_space<vmem>>, vector<8x8xf32>
    %c0_8 = arith.constant 0 : index
    %c0_9 = arith.constant 0 : index
    %17 = vector.load %arg12[%c0_8, %c0_9] : memref<8x32xf32, #tpu.memory_space<vmem>>, vector<8x8xf32>
    %cst_10 = arith.constant dense<0.000000e+00> : vector<8x8xf32>
    %18 = tpu.matmul %15, %16, %cst_10 {dimension_numbers = #tpu.dot_dimension_numbers<[1], [1], [0], [0], [0, 0, 1, 0], [], []>} : vector<8x8xf32>, vector<8x8xf32>, vector<8x8xf32> -> vector<8x8xf32>
    %cst_11 = arith.constant dense<0xFF800000> : vector<8xf32>
    %19 = vector.multi_reduction <maximumf>, %18, %cst_11 [1] : vector<8x8xf32> to vector<8xf32>
    %20 = vector.shape_cast %19 : vector<8xf32> to vector<8x1xf32>
    %21 = vector.broadcast %20 : vector<8x1xf32> to vector<8x8xf32>
    %22 = arith.subf %18, %21 : vector<8x8xf32>
    %23 = math.exp %22 : vector<8x8xf32>
    %cst_12 = arith.constant dense<0.000000e+00> : vector<8xf32>
    %24 = vector.multi_reduction <add>, %23, %cst_12 [1] : vector<8x8xf32> to vector<8xf32>
    %25 = vector.shape_cast %24 : vector<8xf32> to vector<8x1xf32>
    %26 = tpu.reciprocal %25 : vector<8x1xf32> -> vector<8x1xf32>
    %27 = vector.broadcast %26 : vector<8x1xf32> to vector<8x8xf32>
    %28 = arith.mulf %23, %27 : vector<8x8xf32>
    %cst_13 = arith.constant dense<0.000000e+00> : vector<8x8xf32>
    %29 = tpu.matmul %28, %17, %cst_13 {dimension_numbers = #tpu.dot_dimension_numbers<[1], [0], [0], [1], [0, 0, 1, 1], [], []>} : vector<8x8xf32>, vector<8x8xf32>, vector<8x8xf32> -> vector<8x8xf32>
    %c0_14 = arith.constant 0 : index
    %c0_15 = arith.constant 0 : index
    %30 = vector.load %arg13[%c0_14, %c0_15] : memref<8x32xf32, #tpu.memory_space<vmem>>, vector<8x8xf32>
    tpu.vector_store %arg13[%c0_14, %c0_15], %29 {strides = array<i32>} : memref<8x32xf32, #tpu.memory_space<vmem>>, vector<8x8xf32>,
    %31 = vector.extract_strided_slice %14 {offsets = [0, 8], sizes = [8, 8], strides = [1, 1]} : vector<8x32xf32> to vector<8x8xf32>
    %c0_16 = arith.constant 0 : index
    %c8 = arith.constant 8 : index
    %32 = vector.load %arg11[%c0_16, %c8] : memref<8x32xf32, #tpu.memory_space<vmem>>, vector<8x8xf32>
    %c0_17 = arith.constant 0 : index
    %c8_18 = arith.constant 8 : index
    %33 = vector.load %arg12[%c0_17, %c8_18] : memref<8x32xf32, #tpu.memory_space<vmem>>, vector<8x8xf32>
    %cst_19 = arith.constant dense<0.000000e+00> : vector<8x8xf32>
    %34 = tpu.matmul %31, %32, %cst_19 {dimension_numbers = #tpu.dot_dimension_numbers<[1], [1], [0], [0], [0, 0, 1, 0], [], []>} : vector<8x8xf32>, vector<8x8xf32>, vector<8x8xf32> -> vector<8x8xf32>
    %cst_20 = arith.constant dense<0xFF800000> : vector<8xf32>
    %35 = vector.multi_reduction <maximumf>, %34, %cst_20 [1] : vector<8x8xf32> to vector<8xf32>
    %36 = vector.shape_cast %35 : vector<8xf32> to vector<8x1xf32>
    %37 = vector.broadcast %36 : vector<8x1xf32> to vector<8x8xf32>
    %38 = arith.subf %34, %37 : vector<8x8xf32>
    %39 = math.exp %38 : vector<8x8xf32>
    %cst_21 = arith.constant dense<0.000000e+00> : vector<8xf32>
    %40 = vector.multi_reduction <add>, %39, %cst_21 [1] : vector<8x8xf32> to vector<8xf32>
    %41 = vector.shape_cast %40 : vector<8xf32> to vector<8x1xf32>
    %42 = tpu.reciprocal %41 : vector<8x1xf32> -> vector<8x1xf32>
    %43 = vector.broadcast %42 : vector<8x1xf32> to vector<8x8xf32>
    %44 = arith.mulf %39, %43 : vector<8x8xf32>
    %cst_22 = arith.constant dense<0.000000e+00> : vector<8x8xf32>
    %45 = tpu.matmul %44, %33, %cst_22 {dimension_numbers = #tpu.dot_dimension_numbers<[1], [0], [0], [1], [0, 0, 1, 1], [], []>} : vector<8x8xf32>, vector<8x8xf32>, vector<8x8xf32> -> vector<8x8xf32>
    %c0_23 = arith.constant 0 : index
    %c8_24 = arith.constant 8 : index
    %46 = vector.load %arg13[%c0_23, %c8_24] : memref<8x32xf32, #tpu.memory_space<vmem>>, vector<8x8xf32>
    tpu.vector_store %arg13[%c0_23, %c8_24], %45 {strides = array<i32>} : memref<8x32xf32, #tpu.memory_space<vmem>>, vector<8x8xf32>,
    %47 = vector.extract_strided_slice %14 {offsets = [0, 16], sizes = [8, 8], strides = [1, 1]} : vector<8x32xf32> to vector<8x8xf32>
    %c0_25 = arith.constant 0 : index
    %c16 = arith.constant 16 : index
    %48 = vector.load %arg11[%c0_25, %c16] : memref<8x32xf32, #tpu.memory_space<vmem>>, vector<8x8xf32>
    %c0_26 = arith.constant 0 : index
    %c16_27 = arith.constant 16 : index
    %49 = vector.load %arg12[%c0_26, %c16_27] : memref<8x32xf32, #tpu.memory_space<vmem>>, vector<8x8xf32>
    %cst_28 = arith.constant dense<0.000000e+00> : vector<8x8xf32>
    %50 = tpu.matmul %47, %48, %cst_28 {dimension_numbers = #tpu.dot_dimension_numbers<[1], [1], [0], [0], [0, 0, 1, 0], [], []>} : vector<8x8xf32>, vector<8x8xf32>, vector<8x8xf32> -> vector<8x8xf32>
    %cst_29 = arith.constant dense<0xFF800000> : vector<8xf32>
    %51 = vector.multi_reduction <maximumf>, %50, %cst_29 [1] : vector<8x8xf32> to vector<8xf32>
    %52 = vector.shape_cast %51 : vector<8xf32> to vector<8x1xf32>
    %53 = vector.broadcast %52 : vector<8x1xf32> to vector<8x8xf32>
    %54 = arith.subf %50, %53 : vector<8x8xf32>
    %55 = math.exp %54 : vector<8x8xf32>
    %cst_30 = arith.constant dense<0.000000e+00> : vector<8xf32>
    %56 = vector.multi_reduction <add>, %55, %cst_30 [1] : vector<8x8xf32> to vector<8xf32>
    %57 = vector.shape_cast %56 : vector<8xf32> to vector<8x1xf32>
    %58 = tpu.reciprocal %57 : vector<8x1xf32> -> vector<8x1xf32>
    %59 = vector.broadcast %58 : vector<8x1xf32> to vector<8x8xf32>
    %60 = arith.mulf %55, %59 : vector<8x8xf32>
    %cst_31 = arith.constant dense<0.000000e+00> : vector<8x8xf32>
    %61 = tpu.matmul %60, %49, %cst_31 {dimension_numbers = #tpu.dot_dimension_numbers<[1], [0], [0], [1], [0, 0, 1, 1], [], []>} : vector<8x8xf32>, vector<8x8xf32>, vector<8x8xf32> -> vector<8x8xf32>
    %c0_32 = arith.constant 0 : index
    %c16_33 = arith.constant 16 : index
    %62 = vector.load %arg13[%c0_32, %c16_33] : memref<8x32xf32, #tpu.memory_space<vmem>>, vector<8x8xf32>
    tpu.vector_store %arg13[%c0_32, %c16_33], %61 {strides = array<i32>} : memref<8x32xf32, #tpu.memory_space<vmem>>, vector<8x8xf32>,
    %63 = vector.extract_strided_slice %14 {offsets = [0, 24], sizes = [8, 8], strides = [1, 1]} : vector<8x32xf32> to vector<8x8xf32>
    %c0_34 = arith.constant 0 : index
    %c24 = arith.constant 24 : index
    %64 = vector.load %arg11[%c0_34, %c24] : memref<8x32xf32, #tpu.memory_space<vmem>>, vector<8x8xf32>
    %c0_35 = arith.constant 0 : index
    %c24_36 = arith.constant 24 : index
    %65 = vector.load %arg12[%c0_35, %c24_36] : memref<8x32xf32, #tpu.memory_space<vmem>>, vector<8x8xf32>
    %cst_37 = arith.constant dense<0.000000e+00> : vector<8x8xf32>
    %66 = tpu.matmul %63, %64, %cst_37 {dimension_numbers = #tpu.dot_dimension_numbers<[1], [1], [0], [0], [0, 0, 1, 0], [], []>} : vector<8x8xf32>, vector<8x8xf32>, vector<8x8xf32> -> vector<8x8xf32>
    %cst_38 = arith.constant dense<0xFF800000> : vector<8xf32>
    %67 = vector.multi_reduction <maximumf>, %66, %cst_38 [1] : vector<8x8xf32> to vector<8xf32>
    %68 = vector.shape_cast %67 : vector<8xf32> to vector<8x1xf32>
    %69 = vector.broadcast %68 : vector<8x1xf32> to vector<8x8xf32>
    %70 = arith.subf %66, %69 : vector<8x8xf32>
    %71 = math.exp %70 : vector<8x8xf32>
    %cst_39 = arith.constant dense<0.000000e+00> : vector<8xf32>
    %72 = vector.multi_reduction <add>, %71, %cst_39 [1] : vector<8x8xf32> to vector<8xf32>
    %73 = vector.shape_cast %72 : vector<8xf32> to vector<8x1xf32>
    %74 = tpu.reciprocal %73 : vector<8x1xf32> -> vector<8x1xf32>
    %75 = vector.broadcast %74 : vector<8x1xf32> to vector<8x8xf32>
    %76 = arith.mulf %71, %75 : vector<8x8xf32>
    %cst_40 = arith.constant dense<0.000000e+00> : vector<8x8xf32>
    %77 = tpu.matmul %76, %65, %cst_40 {dimension_numbers = #tpu.dot_dimension_numbers<[1], [0], [0], [1], [0, 0, 1, 1], [], []>} : vector<8x8xf32>, vector<8x8xf32>, vector<8x8xf32> -> vector<8x8xf32>
    %c0_41 = arith.constant 0 : index
    %c24_42 = arith.constant 24 : index
    %78 = vector.load %arg13[%c0_41, %c24_42] : memref<8x32xf32, #tpu.memory_space<vmem>>, vector<8x8xf32>
    tpu.vector_store %arg13[%c0_41, %c24_42], %77 {strides = array<i32>} : memref<8x32xf32, #tpu.memory_space<vmem>>, vector<8x8xf32>,
    %c0_43 = arith.constant 0 : index
    %c0_44 = arith.constant 0 : index
    %79 = vector.load %arg13[%c0_43, %c0_44] : memref<8x32xf32, #tpu.memory_space<vmem>>, vector<8x32xf32>
    %c0_45 = arith.constant 0 : index
    %c0_46 = arith.constant 0 : index
    %80 = vector.load %arg8[%c0_45, %c0_46] : memref<32x32xf32, #tpu.memory_space<vmem>>, vector<32x32xf32>
    %cst_47 = arith.constant dense<0.000000e+00> : vector<8x32xf32>
    %81 = tpu.matmul %79, %80, %cst_47 {dimension_numbers = #tpu.dot_dimension_numbers<[1], [0], [0], [1], [0, 0, 1, 1], [], []>} : vector<8x32xf32>, vector<32x32xf32>, vector<8x32xf32> -> vector<8x32xf32>
    %c0_48 = arith.constant 0 : index
    %c0_49 = arith.constant 0 : index
    %82 = vector.load %arg9[%c0_48, %c0_49] : memref<1x32xf32, #tpu.memory_space<vmem>>, vector<1x32xf32>
    %83 = vector.shape_cast %82 : vector<1x32xf32> to vector<32xf32>
    %84 = vector.shape_cast %83 : vector<32xf32> to vector<1x32xf32>
    %85 = vector.broadcast %84 : vector<1x32xf32> to vector<8x32xf32>
    %86 = arith.addf %81, %85 : vector<8x32xf32>
    %c0_50 = arith.constant 0 : index
    %c0_51 = arith.constant 0 : index
    %c0_52 = arith.constant 0 : index
    %87 = vector.load %arg10[%c0_50, %c0_51, %c0_52] : memref<1x8x32xf32, #tpu.memory_space<vmem>>, vector<1x8x32xf32>
    %88 = vector.shape_cast %87 : vector<1x8x32xf32> to vector<8x32xf32>
    %89 = vector.shape_cast %86 : vector<8x32xf32> to vector<1x8x32xf32>
    tpu.vector_store %arg10[%c0_50, %c0_51, %c0_52], %89 {strides = array<i32>} : memref<1x8x32xf32, #tpu.memory_space<vmem>>, vector<1x8x32xf32>,
    return
  }
  func.func @transform_0(%arg0: i32, %arg1: i32) -> (i32, i32, i32) {
    %c0_i32 = arith.constant 0 : i32
    %c0_i32_0 = arith.constant 0 : i32
    %c0_i32_1 = arith.constant 0 : i32
    return %arg0, %c0_i32, %c0_i32_0 : i32, i32, i32
  }
  func.func @transform_1(%arg0: i32, %arg1: i32) -> (i32, i32) {
    %c0_i32 = arith.constant 0 : i32
    %c0_i32_0 = arith.constant 0 : i32
    %c0_i32_1 = arith.constant 0 : i32
    return %c0_i32, %c0_i32_0 : i32, i32
  }
  func.func @transform_2(%arg0: i32, %arg1: i32) -> (i32, i32) {
    %c0_i32 = arith.constant 0 : i32
    %c0_i32_0 = arith.constant 0 : i32
    %c0_i32_1 = arith.constant 0 : i32
    return %c0_i32, %c0_i32_0 : i32, i32
  }
  func.func @transform_3(%arg0: i32, %arg1: i32) -> (i32, i32) {
    %c0_i32 = arith.constant 0 : i32
    %c0_i32_0 = arith.constant 0 : i32
    %c0_i32_1 = arith.constant 0 : i32
    return %c0_i32, %c0_i32_0 : i32, i32
  }
  func.func @transform_4(%arg0: i32, %arg1: i32) -> (i32, i32) {
    %c0_i32 = arith.constant 0 : i32
    %c0_i32_0 = arith.constant 0 : i32
    %c0_i32_1 = arith.constant 0 : i32
    return %c0_i32, %c0_i32_0 : i32, i32
  }
  func.func @transform_5(%arg0: i32, %arg1: i32) -> (i32, i32) {
    %c0_i32 = arith.constant 0 : i32
    %c0_i32_0 = arith.constant 0 : i32
    %c0_i32_1 = arith.constant 0 : i32
    return %c0_i32, %c0_i32_0 : i32, i32
  }
  func.func @transform_6(%arg0: i32, %arg1: i32) -> (i32, i32) {
    %c0_i32 = arith.constant 0 : i32
    %c0_i32_0 = arith.constant 0 : i32
    %c0_i32_1 = arith.constant 0 : i32
    return %c0_i32, %c0_i32_0 : i32, i32
  }
  func.func @transform_7(%arg0: i32, %arg1: i32) -> (i32, i32) {
    %c0_i32 = arith.constant 0 : i32
    %c0_i32_0 = arith.constant 0 : i32
    %c0_i32_1 = arith.constant 0 : i32
    return %c0_i32, %c0_i32_0 : i32, i32
  }
  func.func @transform_8(%arg0: i32, %arg1: i32) -> (i32, i32, i32) {
    %c0_i32 = arith.constant 0 : i32
    %c0_i32_0 = arith.constant 0 : i32
    return %arg0, %arg1, %c0_i32 : i32, i32, i32
  }
}

</mosaic_0001>

<bundles_post_ra>
// kernel: tpu_custom_call.1
= control target key start
LH: loop header
LB: loop body
LE: loop exit
PB: predicated region body
PF: predicated region fallthrough
CT: control target
= control target key end

     0   :  { %s2823_s0 = inlined_call_operand.hbm [shape: f32[2,8,32], index: 0, kind: input, shape index: {}]   ;;  %s2824_s1 = inlined_call_operand.hbm [shape: f32[32,32], index: 1, kind: input, shape index: {}]   ;;  %s2825_s2 = inlined_call_operand.hbm [shape: f32[1,32], index: 2, kind: input, shape index: {}]   ;;  %s2826_s3 = inlined_call_operand.hbm [shape: f32[32,32], index: 3, kind: input, shape index: {}]   ;;  %s2827_s4 = inlined_call_operand.hbm [shape: f32[32,32], index: 4, kind: input, shape index: {}]   ;;  %s2828_s5 = inlined_call_operand.hbm [shape: f32[1,32], index: 5, kind: input, shape index: {}]   ;;  %s2829_s6 = inlined_call_operand.hbm [shape: f32[32,32], index: 6, kind: input, shape index: {}]   ;;  %s2830_s7 = inlined_call_operand.hbm [shape: f32[1,32], index: 7, kind: input, shape index: {}]   ;;  %s2831_s8 = inlined_call_operand.hbm [shape: f32[2,8,32], index: 8, kind: output, shape index: {}]  }
   0x1   :  { %2840 = sst [smem:[#allocation27_spill]] %s2824_s1 }
   0x2   :  { %2841 = sst [smem:[#allocation28_spill]] %s2831_s8 }
   0x3   :  { %13 = vsyncpa [#allocation6], 0 }
   0x4   :  { %15 = vsyncpa [#allocation6 + $0x1], 0 }
   0x5   :  { %16 = vsyncpa [#allocation9], 0 }
   0x6   :  { %17 = vsyncpa [#allocation12], 0 }
   0x7   :  { %18 = vsyncpa [#allocation15], 0 }
   0x8   :  { %19 = vsyncpa [#allocation18], 0 }
   0x9   :  { %20 = vsyncpa [#allocation7], 0 }
   0xa   :  { %22 = vsyncpa [#allocation7 + $0x1], 0  ;;  %s2364_s27 = smov 0   ;;  %s2366_s28 = smov 0  }
   0xb   :  { %s2368_s29 = smov 0   ;;  %s2370_s30 = smov 0  }
   0xc   :  { %s2372_s9 = smov 0   ;;  %s2374_s10 = smov 0  }
   0xd LB: > { %2842 = sst [smem:[#allocation26_spill]] %s2289_s30  ;;  %s2832_s11 = sadd.s32 4294967295, %s2297_s10   ;;  %s2297_s10 = sphi %s2374_s10, %s28_s10   ;;  %s2293_s9 = sphi %s2372_s9, %s2867_s9   ;;  %s2289_s30 = sphi %s2370_s30, %s2866_s30   ;;  %s2285_s29 = sphi %s2368_s29, %s2865_s29   ;;  %s2281_s28 = sphi %s2366_s28, %s2864_s28   ;;  %s2277_s27 = sphi %s2364_s27, %s2863_s27  }
   0xe   : > { %p1625_p0 = scmp.ge.s32.totalorder %s2297_s10, 1  ;;  %p2398_p1 = scmp.eq.s32.totalorder %s2832_s11, 0 }
   0xf   : > { %p246_p2 = scmp.lt.s32.totalorder %s2297_s10, 3  ;;  %s2299_s14 = smov [#allocation8]  }
  0x10   : > { %s2843_s12 = scalar_select %p2398_p1, 1, 0 }
  0x11   : > { %p2403_p3 = pnand %p1625_p0, %p246_p2  ;;  %s258_s15 = sshll.u32 %s2299_s14, 4  ;;  %s2407_s15 = int_to_ptr.vmem [resolvable:$true] %s258_s15 }
  0x12   : > { %s2300_s17 = smov [#allocation11]   ;;  %s2301_s19 = smov [#allocation14]  }
  0x13   : > { %s2844_s13 = scalar_select %p2403_p3, 1, 0 }
  0x14   : > { %p1845_p4 = pneg %p2403_p3  ;;  %s282_s18 = sshll.u32 %s2300_s17, 4  ;;  %s2418_s18 = int_to_ptr.vmem [resolvable:$true] %s282_s18 }
  0x15   : > { %s2420_s20 = sshll.u32 %s2301_s19, 4  ;;  %s2846_s1 = sld [smem:[#allocation27_spill]]  ;;  %s310_s20 = int_to_ptr.vmem [resolvable:$true] %s2420_s20 }
  0x16   : > { %p2414_p6 = pnand %p1845_p4, %p2398_p1 }
  0x18   : > { %p2430_p8 = pneg %p2414_p6 }
  0x1b   : > { %s1973_s23 = scalar_lea.hbm %s2846_s1, 512 }
  0x1c   : > { %p1974_p7 = scmp.ne.s32.totalorder %s2846_s1, %s1973_s23  ;;  %p1980_p11 = scmp.lt.u32.totalorder %s1973_s23, %s2846_s1 }
  0x1e   : > { %p1976_p9 = pnand %p2430_p8, %p1974_p7 }
  0x20   : > { %p1977_p10 = pneg %p1976_p9 }
  0x22   : > { %p1982_p12 = pnand %p1980_p11, %p1977_p10 }
  0x24   : > { %1985 = shalt.err (!%p1982_p12)
}
  0x25   : > { %s1986_s19 = scalar_lea.vmem %s2407_s15, 512  ;;  %p1994_p4 = scmp.lt.s32.totalorder %s2407_s15, %s2407_s15 }
  0x26   : > { %p1987_p13 = scmp.ne.s32.totalorder %s2407_s15, %s1986_s19  ;;  %p1995_p5 = scmp.lt.s32.totalorder %s1986_s19, %s1986_s19 }
  0x28   : > { %p1989_p0 = pnand %p1987_p13, %p2430_p8  ;;  %p1996_p7 = por %p1995_p5, %p1994_p4 }
  0x2a   : > { %p1990_p2 = pneg %p1989_p0 }
  0x2c   : > { %p1997_p9 = pnand %p1996_p7, %p1990_p2 }
  0x2e   : > { %2000 = shalt.err (!%p1997_p9)
}
  0x2f   : > { %s2837_s21 = smov 128   ;;  %s2303_s22 = smov 8  }
  0x30   : > { %1848 = dma.hbm_to_vmem [thread:$0]  (!%p2414_p6), %s2846_s1, 512, %s2407_s15, [#allocation9], %s2837_s21, %s2837_s21, %s2303_s22  }
  0x31   : > { %s2001_s17 = scalar_lea.hbm %s2826_s3, 512 }
  0x32   : > { %p2002_p5 = scmp.ne.s32.totalorder %s2826_s3, %s2001_s17  ;;  %p2008_p12 = scmp.lt.u32.totalorder %s2001_s17, %s2826_s3 }
  0x34   : > { %p2004_p10 = pnand %p2002_p5, %p2430_p8 }
  0x36   : > { %p2005_p11 = pneg %p2004_p10 }
  0x38   : > { %p2010_p13 = pnand %p2008_p12, %p2005_p11 }
  0x3a   : > { %2013 = shalt.err (!%p2010_p13)
}
  0x3b   : > { %s2014_s15 = scalar_lea.vmem %s2418_s18, 512  ;;  %p2022_p7 = scmp.lt.s32.totalorder %s2418_s18, %s2418_s18 }
  0x3c   : > { %p2015_p0 = scmp.ne.s32.totalorder %s2418_s18, %s2014_s15  ;;  %p2023_p9 = scmp.lt.s32.totalorder %s2014_s15, %s2014_s15 }
  0x3e   : > { %p2017_p2 = pnand %p2015_p0, %p2430_p8  ;;  %p2024_p5 = por %p2023_p9, %p2022_p7 }
  0x40   : > { %p2018_p4 = pneg %p2017_p2 }
  0x42   : > { %p2025_p10 = pnand %p2024_p5, %p2018_p4 }
  0x44   : > { %2028 = shalt.err (!%p2025_p10)
}
  0x45   : > { %1854 = dma.hbm_to_vmem [thread:$0]  (!%p2414_p6), %s2826_s3, 512, %s2418_s18, [#allocation12], %s2837_s21, %s2837_s21, %s2303_s22  }
  0x46   : > { %s2029_s24 = scalar_lea.hbm %s2828_s5, 16 }
  0x47   : > { %p2030_p11 = scmp.ne.s32.totalorder %s2828_s5, %s2029_s24  ;;  %p2036_p0 = scmp.lt.u32.totalorder %s2029_s24, %s2828_s5 }
  0x49   : > { %p2032_p12 = pnand %p2030_p11, %p2430_p8 }
  0x4b   : > { %p2033_p13 = pneg %p2032_p12 }
  0x4d   : > { %p2038_p2 = pnand %p2036_p0, %p2033_p13 }
  0x4f   : > { %2041 = shalt.err (!%p2038_p2)
}
  0x50   : > { %s2042_s15 = scalar_lea.vmem %s310_s20, 16  ;;  %s2049_s18 = scalar_lea.vmem %s310_s20, 32 }
  0x51   : > { %p2043_p4 = scmp.ne.s32.totalorder %s310_s20, %s2042_s15  ;;  %p2050_p5 = scmp.lt.s32.totalorder %s310_s20, %s310_s20 }
  0x52   : > { %p2051_p10 = scmp.lt.s32.totalorder %s2049_s18, %s2042_s15 }
  0x53   : > { %p2045_p7 = pnand %p2043_p4, %p2430_p8 }
  0x54   : > { %p2052_p3 = por %p2051_p10, %p2050_p5 }
  0x55   : > { %p2046_p9 = pneg %p2045_p7 }
  0x57   : > { %p2053_p1 = pnand %p2052_p3, %p2046_p9 }
  0x59   : > { %2056 = shalt.err (!%p2053_p1)
}
  0x5a   : > { %1860 = dma.hbm_to_vmem [thread:$0]  (!%p2414_p6), %s2828_s5, 16, %s310_s20, [#allocation15]  }
  0x5b   : > { %s2304_s11 = smov [#allocation10]   ;;  %s2305_s24 = smov [#allocation13]  }
  0x5c   : > { %s272_s23 = sshll.u32 %s2304_s11, 4  ;;  %s295_s25 = sshll.u32 %s2305_s24, 4  ;;  %s273_s23 = int_to_ptr.vmem [resolvable:$true] %s272_s23  ;;  %s296_s25 = int_to_ptr.vmem [resolvable:$true] %s295_s25 }
  0x5d   : > { %s2057_s19 = scalar_lea.hbm %s2825_s2, 16 }
  0x5e   : > { %p2058_p1 = scmp.ne.s32.totalorder %s2825_s2, %s2057_s19  ;;  %p2064_p12 = scmp.lt.u32.totalorder %s2057_s19, %s2825_s2 }
  0x60   : > { %p2060_p3 = pnand %p2058_p1, %p2430_p8 }
  0x62   : > { %p2061_p11 = pneg %p2060_p3 }
  0x64   : > { %p2066_p13 = pnand %p2064_p12, %p2061_p11 }
  0x66   : > { %2069 = shalt.err (!%p2066_p13)
}
  0x67   : > { %s2070_s20 = scalar_lea.vmem %s273_s23, 16  ;;  %s2077_s30 = scalar_lea.vmem %s273_s23, 32 }
  0x68   : > { %p2071_p0 = scmp.ne.s32.totalorder %s273_s23, %s2070_s20  ;;  %p2078_p7 = scmp.lt.s32.totalorder %s273_s23, %s273_s23 }
  0x69   : > { %p2079_p9 = scmp.lt.s32.totalorder %s2077_s30, %s2070_s20 }
  0x6a   : > { %p2073_p2 = pnand %p2071_p0, %p2430_p8 }
  0x6b   : > { %p2080_p5 = por %p2079_p9, %p2078_p7 }
  0x6c   : > { %p2074_p4 = pneg %p2073_p2 }
  0x6e   : > { %p2081_p10 = pnand %p2080_p5, %p2074_p4 }
  0x70   : > { %2084 = shalt.err (!%p2081_p10)
}
  0x71   : > { %1851 = dma.hbm_to_vmem [thread:$0]  (!%p2414_p6), %s2825_s2, 16, %s273_s23, [#allocation9]  }
  0x72   : > { %s2085_s17 = scalar_lea.hbm %s2827_s4, 512 }
  0x73   : > { %p2086_p1 = scmp.ne.s32.totalorder %s2827_s4, %s2085_s17  ;;  %p2092_p12 = scmp.lt.u32.totalorder %s2085_s17, %s2827_s4 }
  0x75   : > { %p2088_p3 = pnand %p2086_p1, %p2430_p8 }
  0x77   : > { %p2089_p11 = pneg %p2088_p3 }
  0x79   : > { %p2094_p13 = pnand %p2092_p12, %p2089_p11 }
  0x7b   : > { %2097 = shalt.err (!%p2094_p13)
}
  0x7c   : > { %s2098_s20 = scalar_lea.vmem %s296_s25, 512  ;;  %p2106_p7 = scmp.lt.s32.totalorder %s296_s25, %s296_s25 }
  0x7d   : > { %p2099_p0 = scmp.ne.s32.totalorder %s296_s25, %s2098_s20  ;;  %p2107_p9 = scmp.lt.s32.totalorder %s2098_s20, %s2098_s20 }
  0x7f   : > { %p2101_p2 = pnand %p2099_p0, %p2430_p8  ;;  %p2108_p5 = por %p2107_p9, %p2106_p7 }
  0x81   : > { %p2102_p4 = pneg %p2101_p2 }
  0x83   : > { %p2109_p10 = pnand %p2108_p5, %p2102_p4 }
  0x85   : > { %2112 = shalt.err (!%p2109_p10)
}
  0x86   : > { %s2848_s23 = smov 128   ;;  %s2306_s24 = smov [#allocation16]  }
  0x87   : > { %1857 = dma.hbm_to_vmem [thread:$0]  (!%p2414_p6), %s2827_s4, 512, %s296_s25, [#allocation12], %s2848_s23, %s2848_s23, %s2303_s22  }
  0x88   : > { %s319_s21 = sshll.u32 %s2306_s24, 4  ;;  %s2307_s14 = smov [#allocation17]   ;;  %s320_s21 = int_to_ptr.vmem [resolvable:$true] %s319_s21 }
  0x89   : > { %s333_s17 = sshll.u32 %s2307_s14, 4  ;;  %s2113_s18 = scalar_lea.hbm %s2829_s6, 512  ;;  %s334_s17 = int_to_ptr.vmem [resolvable:$true] %s333_s17 }
  0x8a   : > { %p2114_p1 = scmp.ne.s32.totalorder %s2829_s6, %s2113_s18  ;;  %p2120_p12 = scmp.lt.u32.totalorder %s2113_s18, %s2829_s6 }
  0x8c   : > { %p2116_p3 = pnand %p2114_p1, %p2430_p8 }
  0x8e   : > { %p2117_p11 = pneg %p2116_p3 }
  0x90   : > { %p2122_p13 = pnand %p2120_p12, %p2117_p11 }
  0x92   : > { %2125 = shalt.err (!%p2122_p13)
}
  0x93   : > { %s2126_s25 = scalar_lea.vmem %s320_s21, 512  ;;  %p2134_p7 = scmp.lt.s32.totalorder %s320_s21, %s320_s21 }
  0x94   : > { %p2127_p0 = scmp.ne.s32.totalorder %s320_s21, %s2126_s25  ;;  %p2135_p9 = scmp.lt.s32.totalorder %s2126_s25, %s2126_s25 }
  0x96   : > { %p2129_p2 = pnand %p2127_p0, %p2430_p8  ;;  %p2136_p5 = por %p2135_p9, %p2134_p7 }
  0x98   : > { %p2130_p4 = pneg %p2129_p2 }
  0x9a   : > { %p2137_p10 = pnand %p2136_p5, %p2130_p4 }
  0x9c   : > { %2140 = shalt.err (!%p2137_p10)
}
  0x9d   : > { %1863 = dma.hbm_to_vmem [thread:$0]  (!%p2414_p6), %s2829_s6, 512, %s320_s21, [#allocation15], %s2848_s23, %s2848_s23, %s2303_s22  }
  0x9e   : > { %s2141_s19 = scalar_lea.hbm %s2830_s7, 16 }
  0x9f   : > { %p2142_p1 = scmp.ne.s32.totalorder %s2830_s7, %s2141_s19  ;;  %p2148_p12 = scmp.lt.u32.totalorder %s2141_s19, %s2830_s7 }
  0xa1   : > { %p2144_p3 = pnand %p2142_p1, %p2430_p8 }
  0xa3   : > { %p2145_p11 = pneg %p2144_p3 }
  0xa5   : > { %p2150_p13 = pnand %p2148_p12, %p2145_p11 }
  0xa7   : > { %2153 = shalt.err (!%p2150_p13)
}
  0xa8   : > { %s2154_s30 = scalar_lea.vmem %s334_s17, 16  ;;  %s2161_s22 = scalar_lea.vmem %s334_s17, 32 }
  0xa9   : > { %p2155_p0 = scmp.ne.s32.totalorder %s334_s17, %s2154_s30  ;;  %p2162_p7 = scmp.lt.s32.totalorder %s334_s17, %s334_s17 }
  0xaa   : > { %p2163_p9 = scmp.lt.s32.totalorder %s2161_s22, %s2154_s30 }
  0xab   : > { %p2157_p2 = pnand %p2155_p0, %p2430_p8 }
  0xac   : > { %p2164_p5 = por %p2163_p9, %p2162_p7 }
  0xad   : > { %p2158_p4 = pneg %p2157_p2 }
  0xaf   : > { %p2165_p10 = pnand %p2164_p5, %p2158_p4 }
  0xb1   : > { %2168 = shalt.err (!%p2165_p10)
}
  0xb2   : > { %1866 = dma.hbm_to_vmem [thread:$0]  (!%p2414_p6), %s2830_s7, 16, %s334_s17, [#allocation18]  }
  0xb3   : > { %s1624_s26 = sadd.s32 4294967294, %s2297_s10   ;;  %s40_s25 = sadd.s32 1, %s2293_s9 }
  0xb4   : > { %s47_s16 = sadd.s32 1, %s2285_s29  ;;  %p42_p8 = scmp.ge.s32.totalorder %s40_s25, 2 }
  0xb5   : > { %p54_p1 = scmp.ne.s32.totalorder %s2285_s29, %s2281_s28  ;;  %p55_p3 = scmp.eq.s32.totalorder %s2297_s10, 0 }
  0xb6   : > { %p60_p11 = scmp.ne.s32.totalorder %s2281_s28, %s2277_s27  ;;  %s2869_s25 = smov (%p42_p8, %s40_s25), 0 }
  0xb7   : > { %p2587_p12 = por %p55_p3, %p54_p1  ;;  %p2850_p13 = scmp.ne.s32.totalorder %s2843_s12, 0 }
  0xb8   : > { %s44_s11 = ssub.s32 %s2293_s9, %s2869_s25  ;;  %s2852_s24 = sadd.s32 4294967295, %s2297_s10  }
  0xb9   : > { %p2593_p6 = por %p2850_p13, %p60_p11  ;;  %p233_p0 = scmp.eq.s32.totalorder %s2852_s24, 1 }
  0xba   : > { %p45_p2 = scmp.eq.s32.totalorder %s44_s11, 0  ;;  %p239_p4 = scmp.eq.s32.totalorder %s1624_s26, 1 }
  0xbb   : > { %p2601_p7 = por %p233_p0, %p54_p1  ;;  %p1882_p9 = scmp.lt.s32.totalorder %s2297_s10, 2 }
  0xbc   : > { %s2607_s19 = scalar_select %p45_p2, %s2285_s29, %s47_s16  }
  0xbd   : > { %s2853_s14 = scalar_select %p2601_p7, 1, 0 }
  0xbe   : > { %p2609_p5 = por %p239_p4, %p60_p11  ;;  %s344_s18 = sand.u32 1, %s2285_s29  }
  0xbf   : > { %s1634_s8 = sshll.u32 %s344_s18, 3  ;;  %s1635_s20 = sshll.u32 %s2293_s9, 7 }
  0xc0   : > { %s2854_s15 = scalar_select %p2609_p5, 1, 0 }
  0xc1   : > { %s2618_s23 = scalar_lea.hbm %s2823_s0, %s1635_s20  ;;  %s348_s21 = scalar_lea.vmem [#allocation5], %s1634_s8 }
  0xc2   : > { %s355_s26 = sshll.u32 %s348_s21, 4  ;;  %p2624_p10 = pnand %p1882_p9, %p2587_p12  ;;  %s2620_s26 = int_to_ptr.vmem [resolvable:$true] %s355_s26 }
  0xc3   : > { %s345_s11 = scalar_lea.sflag [#allocation6], %s344_s18  ;;  %s2169_s24 = scalar_lea.hbm %s2618_s23, 128 }
  0xc4   : > { %p2170_p8 = scmp.ne.s32.totalorder %s2618_s23, %s2169_s24  ;;  %p2171_p1 = pneg %p2624_p10 }
  0xc5   : > { %s2174_s30 = scalar_lea.hbm %s2823_s0, 256  ;;  %p2175_p12 = scmp.lt.u32.totalorder %s2618_s23, %s2823_s0 }
  0xc6   : > { %p2172_p3 = pnand %p2171_p1, %p2170_p8  ;;  %p2176_p13 = scmp.lt.u32.totalorder %s2174_s30, %s2169_s24 }
  0xc7   : > { %p2178_p2 = scmp.lt.u32.totalorder %s2169_s24, %s2618_s23 }
  0xc8   : > { %p2173_p11 = pneg %p2172_p3  ;;  %p2177_p0 = por %p2176_p13, %p2175_p12 }
  0xca   : > { %p2179_p4 = por %p2178_p2, %p2177_p0 }
  0xcc   : > { %p2180_p9 = pnand %p2179_p4, %p2173_p11 }
  0xce   : > { %2183 = shalt.err (!%p2180_p9)
}
  0xcf   : > { %s2184_s18 = scalar_lea.vmem %s2620_s26, 128  ;;  %s2308_s21 = smov [#allocation5]  }
  0xd0   : > { %p2185_p8 = scmp.ne.s32.totalorder %s2620_s26, %s2184_s18  ;;  %s2189_s8 = sshll.u32 %s2308_s21, 4  ;;  %s2190_s8 = int_to_ptr.vmem [resolvable:$false] %s2189_s8 }
  0xd1   : > { %s2191_s20 = scalar_lea.vmem %s2190_s8, 256  ;;  %p2192_p7 = scmp.lt.s32.totalorder %s2620_s26, %s2190_s8 }
  0xd2   : > { %p2187_p3 = pnand %p2185_p8, %p2171_p1  ;;  %p2193_p12 = scmp.lt.s32.totalorder %s2191_s20, %s2184_s18 }
  0xd4   : > { %p2188_p5 = pneg %p2187_p3  ;;  %p2194_p13 = por %p2193_p12, %p2192_p7 }
  0xd6   : > { %p2195_p0 = pnand %p2194_p13, %p2188_p5 }
  0xd8   : > { %2198 = shalt.err (!%p2195_p0)
}
  0xd9   : > { %1870 = dma.hbm_to_vmem [thread:$0]  (!%p2624_p10), %s2618_s23, 128, %s2620_s26, %s345_s11  }
  0xda   : > { %p2856_p11 = scmp.ne.s32.totalorder %s2844_s13, 0 }
  0xdb   : > { %s2656_s24 = sand.u32 (!%p2856_p11), 1, %s2281_s28  }
  0xdc   : > { %364 = sbr.rel (%p2856_p11) target bundleno = 2155 (0x86b), region = 52  ;;  %s1637_s30 = sshll.u32 (!%p2856_p11), %s2656_s24, 3 }
  0xdd   : > { %s367_s1 = scalar_lea.sflag (!%p2856_p11), [#allocation6], %s2656_s24  ;;  %s2662_s22 = scalar_lea.vmem (!%p2856_p11), [#allocation5], %s1637_s30 }
  0xe3   : > { %2252 = dma.done.wait (%p2593_p6), %s367_s1, 128  }
  0xe4   : > { %2254 = vsyncadd (%p2593_p6), %s367_s1, 4294967168  ;;  %p2857_p7 = scmp.ne.s32.totalorder %s2843_s12, 0 }
  0xe6   : > { %2256 = dma.done.wait (%p2857_p7), [#allocation9], 528  }
  0xe7   : > { %2258 = vsyncadd (%p2857_p7), [#allocation9], 4294966768 }
  0xe8   : > { %2260 = dma.done.wait (%p2857_p7), [#allocation12], 1024  }
  0xe9   : > { %2262 = vsyncadd (%p2857_p7), [#allocation12], 4294966272 }
  0xea   : > { %2264 = dma.done.wait (%p2857_p7), [#allocation15], 528  }
  0xeb   : > { %2266 = vsyncadd (%p2857_p7), [#allocation15], 4294966768 }
  0xec   : > { %2268 = dma.done.wait (%p2857_p7), [#allocation18], 16  }
  0xed   : > { %2270 = vsyncadd (%p2857_p7), [#allocation18], 4294967280  ;;  %v2309_v0 = vmov 0.0|0.0   ;;  %vm2310_vm0 = vmmov 0   ;;  %v2311_v1 = vmov 0.0   ;;  %v436_v2 = vld [vmem:[#allocation11] sm:$0xff] }
  0xee   : > { %1789 = vmatprep.subr.bf16.mxu0 %v2309_v0  ;;  %1713 = vmatprep.mubr.msk.f32.mxu0 %vm2310_vm0, %v2311_v1  ;;  %v437_v3 = vld [vmem:[#allocation11 + $0x8] sm:$0xff]  ;;  %v438_v4 = vld [vmem:[#allocation11 + $0x10] sm:$0xff]  ;;  %v439_v6 = vld [vmem:[#allocation11 + $0x18] sm:$0xff]  ;;  %vm440_vm1 = vcmask 261120   ;;  %vm687_vm2 = vcmask 64512   ;;  %s2312_s12 = smov 120  }
  0xef   : > { %1795 = vmatprep.subr.bf16.mxu1 %v2309_v0  ;;  %1724 = vmatprep.mubr.msk.f32.mxu1 %vm2310_vm0, %v2311_v1  ;;  %v1790_v5 = vpack.c.bf16 %v437_v3, %v436_v2  ;;  %v1793_v7 = vpack.c.bf16 %v439_v6, %v438_v4  ;;  %v514_v8 = vld [vmem:[#allocation13] sm:$0xff]  ;;  %v515_v9 = vld [vmem:[#allocation13 + $0x8] sm:$0xff]  ;;  %v603_v16 = vld [vmem:[#allocation8 + $0x18] sm:$0xff]  ;;  %s2313_s13 = smov 112   ;;  %s2314_s17 = smov 104   ;;  %vm1022_vm3 = vcmask 130112  }
  0xf0   : > { %v600_v10 = vld [vmem:[#allocation8] sm:$0xff]  ;;  %v601_v11 = vld [vmem:[#allocation8 + $0x8] sm:$0xff]  ;;  %v1796_v12 = vpack.c.bf16 %v515_v9, %v514_v8  ;;  %v435_v13 = vld [vmem:[%s2662_s22] sm:$0xff]  ;;  %s2315_s23 = smov 8   ;;  %s2316_s26 = smov 16   ;;  %vm1197_vm4 = vcmask 195712  }
  0xf1   : > { %1791 = vmatpush3.bf16.msra.mxu0 %v1790_v5  ;;  %v1802_v14 = vpack.c.bf16 %v601_v11, %v600_v10  ;;  %v602_v15 = vld [vmem:[#allocation8 + $0x10] sm:$0xff]  ;;  %v517_v19 = vld [vmem:[#allocation13 + $0x18] sm:$0xff]  ;;  %v1647_v28 = vld [vmem:[#allocation14] ss:$0 sm:$0xff]  ;;  %s2858_s16 = sld [smem:[#allocation26_spill]]  ;;  %s2317_s11 = smov 24  }
  0xf2   : > { %1792 = vmatprep.subr.bf16.mxu0 %v2309_v0  ;;  %1797 = vmatpush3.bf16.msra.mxu1 %v1796_v12  ;;  %v1805_v17 = vpack.c.bf16 %v603_v16, %v602_v15  ;;  %v516_v18 = vld [vmem:[#allocation13 + $0x10] sm:$0xff]  ;;  %v1649_v23 = vld [vmem:[#allocation10] ss:$0 sm:$0xff]  ;;  %vm1372_vm5 = vcmask 261312   ;;  %s430_s21 = scalar_lea.vmem [#allocation19], %s1637_s30  ;;  %s2859_s22 = sld [smem:[#allocation28_spill]] }
  0xf3   : > { %1798 = vmatprep.subr.bf16.mxu1 %v2309_v0  ;;  %v1799_v20 = vpack.c.bf16 %v517_v19, %v516_v18  ;;  %s1475_s8 = sshll.u32 %s430_s21, 4  ;;  %p2860_p5 = scmp.ne.s32.totalorder %s2853_s14, 0  ;;  %s2775_s8 = int_to_ptr.vmem [resolvable:$true] %s1475_s8 }
  0xf4   : > { %s2318_s30 = smov [#allocation19]  }
  0xf5   : > { %1794 = vmatpush3.bf16.msra.mxu0 %v1793_v7 }
  0xf6   : > { %1801 = vmatprep.subr.bf16.mxu0 %v2309_v0  ;;  %1800 = vmatpush3.bf16.msra.mxu1 %v1799_v20 }
  0xf7   : > { %1738 = vmatprep.subr.mxu1 %v2311_v1  ;;  %s1666_s18 = sshll.u32 %s2858_s16, 7 }
  0xf8   : > { %1714 = vmatmul.mubr.msk.f32.vlgmr.msra.gmra.mrb[0].mxu0 %vm440_vm1, %v435_v13 }
  0xf9   : > { %1803 = vmatpush3.bf16.msra.mxu0 %v1802_v14  ;;  %1735 = vmatprep.mubr.msk.f32.mxu0 %vm2310_vm0, %v2311_v1 }
  0xfa   : > { %1804 = vmatprep.subr.bf16.mxu0 %v2309_v0  ;;  %1725 = vmatmul.mubr.msk.f32.vlgmr.msra.gmra.mrb[0].mxu1 %vm440_vm1, %v435_v13 }
  0xfb   : > { %1740 = vmatprep.mubr.msk.f32.mxu1 %vm2310_vm0, %v2311_v1 }
  0xfd   : > { %1806 = vmatpush3.bf16.msra.mxu0 %v1805_v17 }
  0xfe   : > { %1758 = vmatprep.subr.mxu0 %v2311_v1 }
 0x100   : > { %1736 = vmatmul.mubr.msk.f32.vlgmr.msra.gmra.mrb[2].mxu0 %vm440_vm1, %v435_v13 }
 0x101   : > { %1760 = vmatprep.mubr.msk.f32.mxu0 %vm2310_vm0, %v2311_v1 }
 0x1cb   : > { %v510_v21 = vpop.f32.mrb[0].mxu0 }
 0x1cc   : > { %595 = vst.msk [vmem:[#allocation2] sm:$0xff] %vm440_vm1, %v510_v21  ;;  %v1715_v22 = vpop.f32.mrb[1].mxu0 }
 0x1cd   : > { %v591_v29 = vpop.f32.mrb[0].mxu1 }
 0x1ce   : > { %v592_v30 = vadd.f32 %v1647_v28, %v591_v29  ;;  %v1726_v31 = vpop.f32.mrb[1].mxu1  ;;  %v1377_v29 = vld [vmem:[#allocation16 + $0x10] sm:$0xff] }
 0x1d0   : > { %596 = vst.msk [vmem:[#allocation3] sm:$0xff] %vm440_vm1, %v592_v30  ;;  %v1378_v30 = vld [vmem:[#allocation16 + $0x18] sm:$0xff] }
 0x1d1   : > { %v1811_v31 = vpack.c.bf16 %v1378_v30, %v1377_v29 }
 0x1d3   : > { %v849_v24 = vld [vmem:[#allocation2] sm:$0xff]  ;;  %v681_v25 = vpop.f32.mrb[2].mxu0 }
 0x1d4   : > { %854 = vrot.lane.b32.xlu1 %v849_v24, %s2312_s12  ;;  %v682_v26 = vadd.f32 %v1649_v23, %v681_v25  ;;  %1739 = vmatpush3.xpose.msk.msra.mxu1 %vm687_vm2, %v849_v24  ;;  %v1737_v27 = vpop.f32.mrb[3].mxu0 }
 0x1d5   : > { %1743 = vmatprep.subr.mxu1 %v2311_v1  ;;  %v1376_v27 = vld [vmem:[#allocation16 + $0x8] sm:$0xff] }
 0x1d7   : > { %1741 = vmatmul.mubr.msk.f32.vlgmr.msra.gmra.mrb[2].mxu1 %vm687_vm2, %v682_v26  ;;  %v2718_v32 = vld [vmem:[#allocation3] sm:$0xff] }
 0x1d8   : > { %851 = vrot.lane.b32.xlu1 %v682_v26, %s2312_s12  ;;  %1745 = vmatprep.mubr.msk.f32.mxu1 %vm2310_vm0, %v2311_v1 }
 0x1d9   : > { %1744 = vmatpush3.msra.mxu1 %v2718_v32 }
 0x1da   : > { %1748 = vmatprep.subr.mxu1 %v2311_v1 }
 0x1dc   : > { %1026 = vrot.lane.b32.xlu1 %v682_v26, %s2313_s13 }
 0x1e0   : > { %1204 = vrot.lane.b32.xlu1 %v849_v24, %s2314_s17 }
 0x1e4   : > { %1201 = vrot.lane.b32.xlu1 %v682_v26, %s2314_s17  ;;  %v1375_v26 = vld [vmem:[#allocation16] sm:$0xff] }
 0x1e5   : > { %v1808_v28 = vpack.c.bf16 %v1376_v27, %v1375_v26 }
 0x246   : > { %v855_v41 = vpop.permute.xlu1 %854 }
 0x24a   : > { %v852_v42 = vpop.permute.xlu1 %851 }
 0x24e   : > { %v1027_v43 = vpop.permute.xlu1 %1026 }
 0x252   : > { %v1205_v46 = vpop.permute.xlu1 %1204 }
 0x256   : > { %v1202_v48 = vpop.permute.xlu1 %1201 }
 0x2aa   : > { %v760_v33 = vpop.f32.mrb[2].mxu1 }
 0x2ab   : > { %v1742_v34 = vpop.f32.mrb[3].mxu1  ;;  %v764_v35 = vsel %vm687_vm2, %v760_v33, -inf }
 0x2ac   : > { %765 = vmax.xlane.f32.xlu0 %v764_v35 }
 0x339   : > { %v766_v36 = vpop.xlane.xlu0 %765 }
 0x33a   : > { %v767_v37 = vsub.f32 %v760_v33, %v766_v36 }
 0x33c   : > { %v768_v38 = vmul.f32 1.442695, %v767_v37 }
 0x33e   : > { %1957 = vpow2.f32 %v768_v38 }
 0x348   : > { %v1958_v39 = vpop.eup %1957 }
 0x349   : > { %v770_v40 = vsel %vm687_vm2, %v1958_v39, 0.0 }
 0x34a   : > { %771 = vadd.xlane.f32.xlu0 %v770_v40  ;;  %v1663_v40 = vld [vmem:[#allocation17] ss:$0 sm:$0xff] }
 0x360   : > { %1029 = vrot.lane.b32.xlu0 %v849_v24, %s2313_s13 }
 0x3d7   : > { %v772_v44 = vpop.xlane.xlu0 %771 }
 0x3d8   : > { %1959 = vrcp.f32 %v772_v44 }
 0x3db   : > { %v1030_v45 = vpop.permute.xlu0 %1029 }
 0x3dc   : > { %1759 = vmatpush3.xpose.msk.msra.mxu0 %vm687_vm2, %v1030_v45 }
 0x3dd   : > { %1768 = vmatprep.subr.mxu0 %v2311_v1 }
 0x3df   : > { %1761 = vmatmul.mubr.msk.f32.vlgmr.msra.gmra.mrb[4].mxu0 %vm687_vm2, %v1027_v43 }
 0x3e0   : > { %1769 = vmatpush3.xpose.msk.msra.mxu0 %vm687_vm2, %v1205_v46  ;;  %1770 = vmatprep.mubr.msk.f32.mxu0 %vm2310_vm0, %v2311_v1 }
 0x3e1   : > { %1807 = vmatprep.subr.bf16.mxu0 %v2309_v0 }
 0x3e2   : > { %v1960_v47 = vpop.eup %1959 }
 0x3e3   : > { %v774_v49 = vmul.f32 %v1960_v47, %v1958_v39  ;;  %1771 = vmatmul.mubr.msk.f32.vlgmr.msra.gmra.mrb[6].mxu0 %vm687_vm2, %v1202_v48 }
 0x3e4   : > { %1786 = vmatprep.mubr.msk.f32.mxu0 %vm2310_vm0, %v2311_v1  ;;  %1809 = vmatpush3.bf16.msra.mxu0 %v1808_v28 }
 0x3e5   : > { %1746 = vmatmul.mubr.msk.f32.vlgmr.msra.gmra.mrb[4].mxu1 %vm687_vm2, %v774_v49  ;;  %1810 = vmatprep.subr.bf16.mxu0 %v2309_v0 }
 0x3e6   : > { %1749 = vmatpush3.xpose.msk.msra.mxu1 %vm687_vm2, %v855_v41  ;;  %1750 = vmatprep.mubr.msk.f32.mxu1 %vm2310_vm0, %v2311_v1 }
 0x3e7   : > { %1753 = vmatprep.subr.mxu1 %v2311_v1 }
 0x3e8   : > { %1812 = vmatpush3.bf16.msra.mxu0 %v1811_v31 }
 0x3e9   : > { %1751 = vmatmul.mubr.msk.f32.vlgmr.msra.gmra.mrb[6].mxu1 %vm687_vm2, %v852_v42 }
 0x3ea   : > { %1755 = vmatprep.mubr.msk.f32.mxu1 %vm2310_vm0, %v2311_v1 }
 0x4b2   : > { %v1101_v50 = vpop.f32.mrb[4].mxu0 }
 0x4b3   : > { %v1762_v51 = vpop.f32.mrb[5].mxu0  ;;  %v1105_v52 = vsel %vm687_vm2, %v1101_v50, -inf }
 0x4b4   : > { %1106 = vmax.xlane.f32.xlu0 %v1105_v52 }
 0x4b6   : > { %v1276_v53 = vpop.f32.mrb[6].mxu0 }
 0x4b7   : > { %v1772_v54 = vpop.f32.mrb[7].mxu0  ;;  %v1280_v60 = vsel %vm687_vm2, %v1276_v53, -inf }
 0x4b8   : > { %v844_v55 = vpop.f32.mrb[4].mxu1 }
 0x4b9   : > { %848 = vst.msk [vmem:[#allocation4] sm:$0xff] %vm687_vm2, %v844_v55  ;;  %v1747_v56 = vpop.f32.mrb[5].mxu1 }
 0x4bc   : > { %v926_v57 = vpop.f32.mrb[6].mxu1 }
 0x4bd   : > { %v1752_v58 = vpop.f32.mrb[7].mxu1  ;;  %v930_v59 = vsel %vm687_vm2, %v926_v57, -inf }
 0x4be   : > { %931 = vmax.xlane.f32.xlu1 %v930_v59 }
 0x4c2   : > { %1281 = vmax.xlane.f32.xlu1 %v1280_v60 }
 0x541   : > { %v1107_v61 = vpop.xlane.xlu0 %1106 }
 0x542   : > { %v1108_v62 = vsub.f32 %v1101_v50, %v1107_v61 }
 0x544   : > { %v1109_v63 = vmul.f32 1.442695, %v1108_v62 }
 0x546   : > { %1961 = vpow2.f32 %v1109_v63 }
 0x54b   : > { %v932_v2 = vpop.xlane.xlu1 %931 }
 0x54c   : > { %v933_v10 = vsub.f32 %v926_v57, %v932_v2 }
 0x54e   : > { %v934_v11 = vmul.f32 1.442695, %v933_v10 }
 0x54f   : > { %v1282_v3 = vpop.xlane.xlu1 %1281 }
 0x550   : > { %v1962_v4 = vpop.eup %1961  ;;  %v1283_v5 = vsub.f32 %v1276_v53, %v1282_v3 }
 0x551   : > { %v1111_v6 = vsel %vm687_vm2, %v1962_v4, 0.0 }
 0x552   : > { %v1284_v7 = vmul.f32 1.442695, %v1283_v5  ;;  %1112 = vadd.xlane.f32.xlu0 %v1111_v6 }
 0x554   : > { %1963 = vpow2.f32 %v1284_v7 }
 0x555   : > { %1965 = vpow2.f32 %v934_v11 }
 0x55e   : > { %v1964_v8 = vpop.eup %1963 }
 0x55f   : > { %v1286_v9 = vsel %vm687_vm2, %v1964_v8, 0.0  ;;  %v1966_v12 = vpop.eup %1965 }
 0x560   : > { %1287 = vadd.xlane.f32.xlu1 %v1286_v9  ;;  %v936_v13 = vsel %vm687_vm2, %v1966_v12, 0.0 }
 0x568   : > { %942 = vrot.lane.b32.xlu0 %v2718_v32, %s2312_s12  ;;  %s2773_s12 = scalar_lea.hbm %s2859_s22, %s1666_s18 }
 0x571   : > { %1117 = vrot.lane.b32.xlu1 %v2718_v32, %s2313_s13  ;;  %s1461_s13 = scalar_lea.sflag [#allocation7], %s2656_s24 }
 0x595   : > { %937 = vadd.xlane.f32.xlu1 %v936_v13 }
 0x5a6   : > { %1292 = vrot.lane.b32.xlu1 %v2718_v32, %s2314_s17  ;;  %s2199_s17 = scalar_lea.vmem %s2775_s8, 128 }
 0x5a7   : > { %p2200_p6 = scmp.ne.s32.totalorder %s2775_s8, %s2199_s17 }
 0x5a9   : > { %p2201_p10 = pnand %p2200_p6, %p2860_p5 }
 0x5ab   : > { %p2202_p1 = pneg %p2201_p10 }
 0x5df   : > { %v1113_v14 = vpop.xlane.xlu0 %1112 }
 0x5e3   : > { %v943_v15 = vpop.permute.xlu0 %942 }
 0x5e4   : > { %1754 = vmatpush3.msra.mxu1 %v943_v15 }
 0x5e5   : > { %1763 = vmatprep.subr.mxu1 %v2311_v1 }
 0x5ed   : > { %v1288_v16 = vpop.xlane.xlu1 %1287 }
 0x5f1   : > { %v1118_v17 = vpop.permute.xlu1 %1117 }
 0x622   : > { %v938_v18 = vpop.xlane.xlu1 %937 }
 0x623   : > { %1967 = vrcp.f32 %v938_v18 }
 0x624   : > { %1969 = vrcp.f32 %v1113_v14 }
 0x625   : > { %1971 = vrcp.f32 %v1288_v16 }
 0x626   : > { %v1293_v24 = vpop.permute.xlu1 %1292 }
 0x62d   : > { %v1968_v19 = vpop.eup %1967 }
 0x62e   : > { %v940_v20 = vmul.f32 %v1968_v19, %v1966_v12  ;;  %v1970_v21 = vpop.eup %1969 }
 0x62f   : > { %v1115_v22 = vmul.f32 %v1970_v21, %v1962_v4  ;;  %v1972_v23 = vpop.eup %1971 }
 0x630   : > { %1756 = vmatmul.mubr.msk.f32.vlgmr.msra.gmra.mrb[8].mxu1 %vm687_vm2, %v940_v20  ;;  %v1290_v25 = vmul.f32 %v1972_v23, %v1964_v8 }
 0x631   : > { %1764 = vmatpush3.msra.mxu1 %v1118_v17  ;;  %1765 = vmatprep.mubr.msk.f32.mxu1 %vm2310_vm0, %v2311_v1 }
 0x632   : > { %1773 = vmatprep.subr.mxu1 %v2311_v1 }
 0x634   : > { %1766 = vmatmul.mubr.msk.f32.vlgmr.msra.gmra.mrb[10].mxu1 %vm687_vm2, %v1115_v22 }
 0x635   : > { %1774 = vmatpush3.msra.mxu1 %v1293_v24  ;;  %1775 = vmatprep.mubr.msk.f32.mxu1 %vm2310_vm0, %v2311_v1 }
 0x638   : > { %1776 = vmatmul.mubr.msk.f32.vlgmr.msra.gmra.mrb[12].mxu1 %vm687_vm2, %v1290_v25 }
 0x703   : > { %v1014_v32 = vpop.f32.mrb[8].mxu1 }
 0x704   : > { %1019 = vrot.lane.b32.xlu0 %v1014_v32, %s2315_s23  ;;  %v1757_v33 = vpop.f32.mrb[9].mxu1  ;;  %s2203_s23 = sshll.u32 %s2318_s30, 4  ;;  %s2204_s23 = int_to_ptr.vmem [resolvable:$false] %s2203_s23 }
 0x705   : > { %p2206_p2 = scmp.lt.s32.totalorder %s2775_s8, %s2204_s23 }
 0x707   : > { %v1189_v34 = vpop.f32.mrb[10].mxu1 }
 0x708   : > { %1194 = vrot.lane.b32.xlu1 %v1189_v34, %s2316_s26  ;;  %v1767_v1 = vpop.f32.mrb[11].mxu1  ;;  %s2205_s26 = scalar_lea.vmem %s2204_s23, 256 }
 0x709   : > { %p2207_p4 = scmp.lt.s32.totalorder %s2205_s26, %s2199_s17 }
 0x70b   : > { %v1364_v35 = vpop.f32.mrb[12].mxu1  ;;  %p2208_p9 = por %p2207_p4, %p2206_p2 }
 0x70c   : > { %1369 = vrot.lane.b32.xlu0 %v1364_v35, %s2317_s11  ;;  %v1777_v36 = vpop.f32.mrb[13].mxu1 }
 0x70d   : > { %p2209_p8 = pnand %p2208_p9, %p2202_p1 }
 0x776   : > { %v1020_v37 = vpop.permute.xlu0 %1019 }
 0x777   : > { %1023 = vst.msk [vmem:[#allocation4] sm:$0xff] %vm1022_vm3, %v1020_v37 }
 0x77a   : > { %v1195_v0 = vpop.permute.xlu1 %1194 }
 0x77b   : > { %1198 = vst.msk [vmem:[#allocation4] sm:$0xff] %vm1197_vm4, %v1195_v0 }
 0x77e   : > { %v1370_v38 = vpop.permute.xlu0 %1369 }
 0x77f   : > { %1373 = vst.msk [vmem:[#allocation4] sm:$0xff] %vm1372_vm5, %v1370_v38 }
 0x786   : > { %v1374_v39 = vld [vmem:[#allocation4] sm:$0xff] }
 0x787   : > { %1787 = vmatmul.mubr.msk.f32.vlgmr.msra.gmra.mrb[8].mxu0 %vm440_vm1, %v1374_v39 }
 0x85a   : > { %v1455_v41 = vpop.f32.mrb[8].mxu0 }
 0x85b   : > { %v1456_v42 = vadd.f32 %v1663_v40, %v1455_v41  ;;  %v1788_v43 = vpop.f32.mrb[9].mxu0 }
 0x85d   : > { %1459 = vst.msk [vmem:[%s430_s21] sm:$0xff] %vm440_vm1, %v1456_v42 }
 0x85e   : > { %2212 = shalt.err (!%p2209_p8)
}
 0x85f   : > { %s2213_s24 = scalar_lea.hbm %s2773_s12, 128  ;;  %s2217_s18 = scalar_lea.hbm %s2859_s22, 256 }
 0x860   : > { %p2214_p3 = scmp.ne.s32.totalorder %s2773_s12, %s2213_s24  ;;  %p2218_p0 = scmp.lt.u32.totalorder %s2773_s12, %s2859_s22 }
 0x861   : > { %p2219_p11 = scmp.lt.u32.totalorder %s2217_s18, %s2213_s24  ;;  %p2221_p6 = scmp.lt.u32.totalorder %s2213_s24, %s2773_s12 }
 0x862   : > { %p2215_p12 = pnand %p2214_p3, %p2860_p5 }
 0x863   : > { %p2220_p7 = por %p2219_p11, %p2218_p0 }
 0x864   : > { %p2216_p13 = pneg %p2215_p12 }
 0x865   : > { %p2222_p10 = por %p2221_p6, %p2220_p7 }
 0x867   : > { %p2223_p1 = pnand %p2222_p10, %p2216_p13 }
 0x869   : > { %2226 = shalt.err (!%p2223_p1)
}
 0x86a   : > { %1843 = dma.vmem_to_hbm [thread:$0]  (%p2860_p5), %s2775_s8, 128, %s2773_s12, %s1461_s13  }
 0x86b PF: > { %s1487_s1 = sand.u32 1, %s2277_s27   ;;  %p2861_p2 = scmp.ne.s32.totalorder %s2854_s15, 0 }
 0x86c   : > { %p2862_p4 = scmp.ge.s32.totalorder %s2297_s10, 2  ;;  %s1488_s17 = scalar_lea.sflag [#allocation7], %s1487_s1 }
 0x86e   : > { %p1872_p9 = pnand %p2862_p4, %p2861_p2 }
 0x870   : > { %2272 = dma.done.wait (!%p1872_p9), %s1488_s17, 128  }
 0x871   : > { %2274 = vsyncadd (!%p1872_p9), %s1488_s17, 4294967168  ;;  %s28_s10 = sadd.s32 1, %s2297_s10   ;;  %s2863_s27 = smov %s2281_s28 }
 0x872   : > { %p25_p8 = scmp.ge.s32.totalorder %s28_s10, 4   ;;  %s2864_s28 = smov %s2285_s29 }
 0x873   : > { %s2865_s29 = smov %s2607_s19  ;;  %s2866_s30 = smov %s2293_s9 }
 0x874   : > { %s2867_s9 = smov %s2869_s25  ;;  %27 = sbr.rel (!%p25_p8) target bundleno = 13 (0xd), region = 130 }
 0x87b   :  { %1493 = vsyncpa [#allocation6], 1 }
 0x87c   :  { %1495 = vsyncpa [#allocation6 + $0x1], 1 }
 0x87d   :  { %1496 = vsyncpa [#allocation9], 1 }
 0x87e   :  { %1497 = vsyncpa [#allocation12], 1 }
 0x87f   :  { %1498 = vsyncpa [#allocation15], 1 }
 0x880   :  { %1499 = vsyncpa [#allocation18], 1 }
 0x881   :  { %1500 = vsyncpa [#allocation7], 1 }
 0x882   :  { %1502 = vsyncpa [#allocation7 + $0x1], 1 }

</bundles_post_ra>
